<compile_context>
chip_gen: v5e
topology: v5e:2x2
jax: 0.10.0
libtpu: 0.0.40
codegen_flags: <defaults>
</compile_context>

<pallas_src>
import functools

import jax
import jax.numpy as jnp
from jax.experimental import pallas as pl
from jax.experimental.pallas import tpu as pltpu

EPS = 1e-8  # matches the DSSM Similarity module


def _round_up(x, m):
    return (x + m - 1) // m * m


def _cos_sim_kernel(q_ref, k_ref, o_ref, *, approx):
    q = q_ref[...].astype(jnp.float32)
    k = k_ref[...].astype(jnp.float32)

    # Three lane-axis reductions fused in a single pass over the tile.
    dot = jnp.sum(q * k, axis=-1)      # (block_rows,)
    qn2 = jnp.sum(q * q, axis=-1)
    kn2 = jnp.sum(k * k, axis=-1)

    # ||q|| * ||k|| == sqrt(qn2 * kn2) (both factors are non-negative).
    denom = jnp.sqrt(qn2 * kn2) + EPS
    if approx:
        score = dot * pl.reciprocal(denom, approx=True)   # EUP, not VPU divide
    else:
        score = dot / denom
    score = jnp.clip(score, -1.0, 1.0)

    # Lane-dense store: (block_rows,) -> the (1, block_rows) output row.
    o_ref[...] = score.reshape(1, -1).astype(o_ref.dtype)


def similarity_cos(query, key, *, block_rows=None, approx=True):
    """Cosine similarity along dim=-1 for 2-D [B, D] inputs. Returns [B]."""
    assert query.ndim == 2 and query.shape == key.shape, (query.shape, key.shape)
    B, D = query.shape
    itemsize = jnp.dtype(query.dtype).itemsize
    d_pad = _round_up(D, 128)  # lane-padded feature footprint in VMEM

    if block_rows is None:
        # ~2 MiB per (lane-padded) input tile, clamped to [8, 2048] rows and
        # never larger than the (sublane-padded) batch.
        target_tile_bytes = 2 << 20
        rows = (target_tile_bytes // (d_pad * itemsize)) // 8 * 8
        rows = max(8, min(2048, rows))
        block_rows = min(rows, _round_up(B, 8))
    # (8, 128) tiling rule: sublane block dim must be a multiple of 8.
    assert block_rows >= 8 and block_rows % 8 == 0, block_rows

    # Pad the batch to a multiple of block_rows; padded rows score exactly 0
    # (0 / (0 + eps)) and are sliced off below.
    B_pad = _round_up(B, block_rows)
    if B_pad != B:
        pad = ((0, B_pad - B), (0, 0))
        query = jnp.pad(query, pad)
        key = jnp.pad(key, pad)
    num_blocks = B_pad // block_rows

    # 2 inputs x 2 pipeline buffers x lane-padded tile + output tiles + headroom.
    in_tile_bytes = block_rows * d_pad * itemsize
    out_tile_bytes = 8 * _round_up(block_rows, 128) * 4
    vmem_limit = int(max(4 * in_tile_bytes + 2 * out_tile_bytes + (4 << 20),
                         16 << 20))

    kernel = functools.partial(_cos_sim_kernel, approx=approx)
    out = pl.pallas_call(
        kernel,
        out_shape=jax.ShapeDtypeStruct((num_blocks, block_rows), query.dtype),
        grid_spec=pltpu.PrefetchScalarGridSpec(
            num_scalar_prefetch=0,
            grid=(num_blocks,),
            in_specs=[
                pl.BlockSpec((block_rows, D), lambda i: (i, 0)),
                pl.BlockSpec((block_rows, D), lambda i: (i, 0)),
            ],
            out_specs=pl.BlockSpec((1, block_rows), lambda i: (i, 0)),
        ),
        compiler_params=pltpu.CompilerParams(
            dimension_semantics=("parallel",),
            vmem_limit_bytes=vmem_limit,
        ),
    )(query, key)
    return out.reshape(B_pad)[:B]


def similarity_cos_ref(query, key):
    q = query.astype(jnp.float32)
    k = key.astype(jnp.float32)
    dot = jnp.sum(q * k, axis=-1)
    qn = jnp.linalg.norm(q, axis=-1)
    kn = jnp.linalg.norm(k, axis=-1)
    return jnp.clip(dot / (qn * kn + EPS), -1.0, 1.0)


if __name__ == "__main__":
    # DSSM towers end in hidden_units=[64, 32] + L2-normalize, so the
    # Similarity inputs are [B, 32] user / item embeddings.
    B, D = 20, 32
    key0 = jax.random.PRNGKey(0)
    kq, kk = jax.random.split(key0)
    query = jax.random.normal(kq, (B, D), dtype=jnp.float32)
    keyv = jax.random.normal(kk, (B, D), dtype=jnp.float32)

    ref = similarity_cos_ref(query, keyv)

    # Default tiling (also exercises the batch-padding path: 20 -> 24 rows).
    score = similarity_cos(query, keyv)
    jax.block_until_ready(score)
    assert score.shape == (B,)
    assert jnp.allclose(score, ref, atol=2e-3, rtol=2e-3)

    # Explicit small tile -> multi-step grid (exercises the pipelined path
    # and the lane-dense multi-block output layout).
    score_tiled = similarity_cos(query, keyv, block_rows=8)
    jax.block_until_ready(score_tiled)
    assert score_tiled.shape == (B,)
    assert jnp.allclose(score_tiled, ref, atol=2e-3, rtol=2e-3)

    print("KERNEL_OK")
</pallas_src>

<mosaic_0001>
module attributes {stable_mosaic.version = 11 : i64} {
  func.func @_cos_sim_kernel(%arg0: i32, %arg1: memref<24x32xf32, #tpu.memory_space<vmem>>, %arg2: memref<24x32xf32, #tpu.memory_space<vmem>>, %arg3: memref<1x24xf32, #tpu.memory_space<vmem>>) attributes {dimension_semantics = [#tpu.dimension_semantics<parallel>], iteration_bounds = array<i64: 1>, scalar_prefetch = 0 : i64, scratch_operands = 0 : i64, tpu.core_type = #tpu.core_type<tc>, window_params = [{transform_indices = @transform_0, window_bounds = array<i64: 24, 32>}, {transform_indices = @transform_1, window_bounds = array<i64: 24, 32>}, {transform_indices = @transform_2, window_bounds = array<i64: 1, 24>}]} {
    %c0 = arith.constant 0 : index
    %c0_0 = arith.constant 0 : index
    %0 = vector.load %arg1[%c0, %c0_0] : memref<24x32xf32, #tpu.memory_space<vmem>>, vector<24x32xf32>
    %c0_1 = arith.constant 0 : index
    %c0_2 = arith.constant 0 : index
    %1 = vector.load %arg2[%c0_1, %c0_2] : memref<24x32xf32, #tpu.memory_space<vmem>>, vector<24x32xf32>
    %2 = arith.mulf %0, %1 : vector<24x32xf32>
    %cst = arith.constant dense<0.000000e+00> : vector<24xf32>
    %3 = vector.multi_reduction <add>, %2, %cst [1] : vector<24x32xf32> to vector<24xf32>
    %4 = arith.mulf %0, %0 : vector<24x32xf32>
    %cst_3 = arith.constant dense<0.000000e+00> : vector<24xf32>
    %5 = vector.multi_reduction <add>, %4, %cst_3 [1] : vector<24x32xf32> to vector<24xf32>
    %6 = arith.mulf %1, %1 : vector<24x32xf32>
    %cst_4 = arith.constant dense<0.000000e+00> : vector<24xf32>
    %7 = vector.multi_reduction <add>, %6, %cst_4 [1] : vector<24x32xf32> to vector<24xf32>
    %8 = arith.mulf %5, %7 : vector<24xf32>
    %9 = math.sqrt %8 : vector<24xf32>
    %cst_5 = arith.constant 9.99999993E-9 : f32
    %10 = vector.broadcast %cst_5 : f32 to vector<24xf32>
    %11 = arith.addf %9, %10 : vector<24xf32>
    %12 = tpu.reciprocal %11 {approx = true} : vector<24xf32> -> vector<24xf32>
    %13 = arith.mulf %3, %12 : vector<24xf32>
    %cst_6 = arith.constant -1.000000e+00 : f32
    %cst_7 = arith.constant 1.000000e+00 : f32
    %14 = vector.broadcast %cst_6 : f32 to vector<24xf32>
    %15 = arith.maximumf %14, %13 : vector<24xf32>
    %16 = vector.broadcast %cst_7 : f32 to vector<24xf32>
    %17 = arith.minimumf %16, %15 : vector<24xf32>
    %18 = vector.shape_cast %17 : vector<24xf32> to vector<1x24xf32>
    %c0_8 = arith.constant 0 : index
    %c0_9 = arith.constant 0 : index
    %19 = vector.load %arg3[%c0_8, %c0_9] : memref<1x24xf32, #tpu.memory_space<vmem>>, vector<1x24xf32>
    tpu.vector_store %arg3[%c0_8, %c0_9], %18 {strides = array<i32>} : memref<1x24xf32, #tpu.memory_space<vmem>>, vector<1x24xf32>,
    return
  }
  func.func @transform_0(%arg0: i32) -> (i32, i32) {
    %c0_i32 = arith.constant 0 : i32
    %c0_i32_0 = arith.constant 0 : i32
    return %arg0, %c0_i32 : i32, i32
  }
  func.func @transform_1(%arg0: i32) -> (i32, i32) {
    %c0_i32 = arith.constant 0 : i32
    %c0_i32_0 = arith.constant 0 : i32
    return %arg0, %c0_i32 : i32, i32
  }
  func.func @transform_2(%arg0: i32) -> (i32, i32) {
    %c0_i32 = arith.constant 0 : i32
    %c0_i32_0 = arith.constant 0 : i32
    return %arg0, %c0_i32 : i32, i32
  }
}

</mosaic_0001>

<bundles_post_ra>
// kernel: tpu_custom_call.1
= control target key start
LH: loop header
LB: loop body
LE: loop exit
PB: predicated region body
PF: predicated region fallthrough
CT: control target
= control target key end

     0   :  { %7 = vsyncpa [#allocation3], 0  ;;  %s312_s0 = inlined_call_operand.hbm [shape: f32[24,32], index: 0, kind: input, shape index: {}]   ;;  %s313_s1 = inlined_call_operand.hbm [shape: f32[24,32], index: 1, kind: input, shape index: {}]   ;;  %s314_s2 = inlined_call_operand.hbm [shape: f32[1,24], index: 2, kind: output, shape index: {}]  }
   0x1   :  { %8 = vsyncpa [#allocation6], 0 }
   0x2   :  { %9 = vsyncpa [#allocation4], 0  ;;  %s14_s11 = sshll.u32 %s312_s0, 4  ;;  %s274_s12 = smov [#allocation2]   ;;  %s15_s11 = int_to_ptr.hbm [resolvable:$true] %s14_s11 }
   0x3   :  { %s16_s13 = sshll.u32 %s274_s12, 4  ;;  %s27_s16 = sshll.u32 %s313_s1, 4  ;;  %s17_s13 = int_to_ptr.vmem [resolvable:$true] %s16_s13  ;;  %s28_s16 = int_to_ptr.hbm [resolvable:$true] %s27_s16 }
   0x4   :  { %s275_s17 = smov 128   ;;  %s276_s18 = smov 8  }
   0x5   :  { %22 = dma.hbm_to_vmem [thread:$0]  %s15_s11, 384, %s17_s13, [#allocation3], %s275_s17, %s275_s17, %s276_s18  }
   0x6   :  { %s277_s19 = smov [#allocation5]  }
   0x7   :  { %s29_s20 = sshll.u32 %s277_s19, 4  ;;  %s30_s20 = int_to_ptr.vmem [resolvable:$true] %s29_s20 }
   0x8   :  { %35 = dma.hbm_to_vmem [thread:$0]  %s28_s16, 384, %s30_s20, [#allocation6], %s275_s17, %s275_s17, %s276_s18  }
   0x9   :  { %268 = dma.done.wait [#allocation3], 384  }
   0xa   :  { %269 = vsyncadd [#allocation3], 4294966912 }
   0xb   :  { %270 = dma.done.wait [#allocation6], 384  }
   0xc   :  { %271 = vsyncadd [#allocation6], 4294966912  ;;  %v47_v0 = vld [vmem:[#allocation5] sm:$0xff]  ;;  %vm53_vm0 = vcmask 261120   ;;  %v46_v1 = vld [vmem:[#allocation2 + $0x10] sm:$0xff]  ;;  %vm149_vm7 = vcmask 130112  }
   0xd   :  { %v44_v2 = vld [vmem:[#allocation2] sm:$0xff]  ;;  %v75_v3 = vmul.f32 %v47_v0, %v47_v0  ;;  %v65_v4 = vmul.f32 %v46_v1, %v46_v1  ;;  %v49_v7 = vld [vmem:[#allocation5 + $0x10] sm:$0xff]  ;;  %s278_s0 = smov [#allocation7]   ;;  %s165_s23 = sshll.u32 %s314_s2, 4  ;;  %vm153_vm8 = vcmask 195712   ;;  %vm156_vm9 = vcmask 188416   ;;  %s166_s23 = int_to_ptr.hbm [resolvable:$true] %s165_s23 }
   0xe   :  { %v63_v5 = vmul.f32 %v44_v2, %v44_v2  ;;  %v48_v6 = vld [vmem:[#allocation5 + $0x8] sm:$0xff]  ;;  %v45_v11 = vld [vmem:[#allocation2 + $0x8] sm:$0xff]  ;;  %v77_v13 = vmul.f32 %v49_v7, %v49_v7  ;;  %v52_v18 = vmul.f32 %v49_v7, %v46_v1  ;;  %v50_v20 = vmul.f32 %v47_v0, %v44_v2  ;;  %s163_s1 = sshll.u32 %s278_s0, 4  ;;  %s164_s1 = int_to_ptr.vmem [resolvable:$true] %s163_s1 }
   0xf   :  { %v78_v8 = vsel %vm53_vm0, %v75_v3, 0.0  ;;  %v72_v9 = vsel %vm53_vm0, %v65_v4, 0.0  ;;  %v76_v12 = vmul.f32 %v48_v6, %v48_v6  ;;  %v64_v14 = vmul.f32 %v45_v11, %v45_v11 }
  0x10   :  { %v66_v10 = vsel %vm53_vm0, %v63_v5, 0.0  ;;  %79 = vadd.xlane.f32.xlu1 %v78_v8  ;;  %73 = vadd.xlane.f32.xlu2 %v72_v9  ;;  %v84_v16 = vsel %vm53_vm0, %v77_v13, 0.0  ;;  %v51_v19 = vmul.f32 %v48_v6, %v45_v11  ;;  %v60_v21 = vsel %vm53_vm0, %v52_v18, 0.0 }
  0x11   :  { %67 = vadd.xlane.f32.xlu0 %v66_v10  ;;  %v81_v15 = vsel %vm53_vm0, %v76_v12, 0.0  ;;  %v69_v17 = vsel %vm53_vm0, %v64_v14, 0.0  ;;  %v54_v23 = vsel %vm53_vm0, %v50_v20, 0.0  ;;  %v144_v3 = vlaneseq }
  0x12   :  { %v57_v22 = vsel %vm53_vm0, %v51_v19, 0.0 }
  0x13   :  { %v145_v7 = vand.u32 127, %v144_v3 }
  0x15   :  { %v151_v11 = vadd.s32 4294967280, %v145_v7  ;;  %v147_v14 = vadd.s32 4294967288, %v145_v7 }
  0x18   :  { %82 = vadd.xlane.f32.xlu1 %v81_v15  ;;  %85 = vadd.xlane.f32.xlu2 %v84_v16 }
  0x19   :  { %70 = vadd.xlane.f32.xlu0 %v69_v17 }
  0x20   :  { %61 = vadd.xlane.f32.xlu2 %v60_v21  ;;  %58 = vadd.xlane.f32.xlu1 %v57_v22 }
  0x21   :  { %55 = vadd.xlane.f32.xlu0 %v54_v23 }
  0x83   :  { %v80_v24 = vpop.xlane.xlu1 %79  ;;  %v74_v25 = vpop.xlane.xlu2 %73 }
  0x84   :  { %v68_v26 = vpop.xlane.xlu0 %67 }
  0x85   :  { %v87_v27 = vmul.f32 %v80_v24, %v68_v26 }
  0x87   :  { %184 = vrsqrt.f32 %v87_v27  ;;  %vm97_vm1 = vcmp.eq.f32.partialorder %v87_v27, inf  ;;  %v100_v46 = vand.u32 2147483648, %v87_v27  ;;  %vm99_vm2 = vcmp.eq.f32.partialorder %v87_v27, 0.0 }
  0x8b   :  { %v83_v28 = vpop.xlane.xlu1 %82  ;;  %v86_v29 = vpop.xlane.xlu2 %85 }
  0x8c   :  { %v89_v30 = vmul.f32 %v86_v29, %v74_v25  ;;  %v71_v31 = vpop.xlane.xlu0 %70 }
  0x8d   :  { %v185_v32 = vpop.eup %184  ;;  %v88_v33 = vmul.f32 %v83_v28, %v71_v31 }
  0x8e   :  { %186 = vrsqrt.f32 %v89_v30  ;;  %v91_v34 = vmul.f32 %v185_v32, %v87_v27  ;;  %vm121_vm3 = vcmp.eq.f32.partialorder %v89_v30, inf  ;;  %v124_v57 = vand.u32 2147483648, %v89_v30 }
  0x8f   :  { %188 = vrsqrt.f32 %v88_v33  ;;  %vm123_vm4 = vcmp.eq.f32.partialorder %v89_v30, 0.0  ;;  %vm109_vm5 = vcmp.eq.f32.partialorder %v88_v33, inf  ;;  %v112_v60 = vand.u32 2147483648, %v88_v33 }
  0x90   :  { %v92_v35 = vmul.f32 %v185_v32, %v91_v34  ;;  %vm111_vm6 = vcmp.eq.f32.partialorder %v88_v33, 0.0 }
  0x92   :  { %v93_v36 = vmul.f32 0.5, %v92_v35 }
  0x93   :  { %v62_v6 = vpop.xlane.xlu2 %61  ;;  %v59_v8 = vpop.xlane.xlu1 %58 }
  0x94   :  { %v187_v37 = vpop.eup %186  ;;  %v94_v38 = vsub.f32 1.5, %v93_v36  ;;  %v56_v4 = vpop.xlane.xlu0 %55 }
  0x95   :  { %v189_v39 = vpop.eup %188  ;;  %v115_v40 = vmul.f32 %v187_v37, %v89_v30 }
  0x96   :  { %v95_v41 = vmul.f32 %v185_v32, %v94_v38  ;;  %v103_v42 = vmul.f32 %v189_v39, %v88_v33 }
  0x97   :  { %v116_v43 = vmul.f32 %v187_v37, %v115_v40 }
  0x98   :  { %v96_v44 = vmul.f32 %v95_v41, %v87_v27  ;;  %v104_v45 = vmul.f32 %v189_v39, %v103_v42 }
  0x99   :  { %v117_v47 = vmul.f32 0.5, %v116_v43 }
  0x9a   :  { %v98_v48 = vsel %vm97_vm1, %v87_v27, %v96_v44  ;;  %v105_v49 = vmul.f32 0.5, %v104_v45 }
  0x9b   :  { %v101_v50 = vsel %vm99_vm2, %v100_v46, %v98_v48  ;;  %v118_v51 = vsub.f32 1.5, %v117_v47 }
  0x9c   :  { %v126_v52 = vadd.f32 1e-08, %v101_v50  ;;  %v106_v53 = vsub.f32 1.5, %v105_v49 }
  0x9d   :  { %v119_v54 = vmul.f32 %v187_v37, %v118_v51 }
  0x9e   :  { %v107_v55 = vmul.f32 %v189_v39, %v106_v53  ;;  %190 = vrcp.f32 %v126_v52 }
  0x9f   :  { %v120_v56 = vmul.f32 %v119_v54, %v89_v30 }
  0xa0   :  { %v108_v58 = vmul.f32 %v107_v55, %v88_v33 }
  0xa1   :  { %v122_v59 = vsel %vm121_vm3, %v89_v30, %v120_v56 }
  0xa2   :  { %v125_v61 = vsel %vm123_vm4, %v124_v57, %v122_v59  ;;  %v110_v62 = vsel %vm109_vm5, %v88_v33, %v108_v58 }
  0xa3   :  { %v128_v63 = vadd.f32 1e-08, %v125_v61  ;;  %v113_v0 = vsel %vm111_vm6, %v112_v60, %v110_v62 }
  0xa4   :  { %v127_v1 = vadd.f32 1e-08, %v113_v0  ;;  %v191_v2 = vpop.eup %190 }
  0xa5   :  { %192 = vrcp.f32 %v128_v63  ;;  %v132_v5 = vmul.f32 %v191_v2, %v56_v4 }
  0xa6   :  { %194 = vrcp.f32 %v127_v1 }
  0xa7   :  { %v176_v13 = vclamps-f32 %v132_v5, 1.0 }
  0xa9   :  { %v146_v19 = vperm.slane %v176_v13, %v145_v7 }
  0xab   :  { %v193_v9 = vpop.eup %192 }
  0xac   :  { %v195_v10 = vpop.eup %194  ;;  %v134_v12 = vmul.f32 %v193_v9, %v62_v6 }
  0xad   :  { %v133_v15 = vmul.f32 %v195_v10, %v59_v8 }
  0xae   :  { %v178_v16 = vclamps-f32 %v134_v12, 1.0 }
  0xaf   :  { %v177_v17 = vclamps-f32 %v133_v15, 1.0 }
  0xb0   :  { %v152_v18 = vperm.slane %v178_v16, %v151_v11 }
  0xb1   :  { %v148_v20 = vperm.slane %v177_v17, %v147_v14 }
  0xb3   :  { %v150_v21 = vsel %vm149_vm7, %v148_v20, %v146_v19 }
  0xb4   :  { %v154_v22 = vsel %vm153_vm8, %v152_v18, %v150_v21 }
  0xb5   :  { %157 = vst.msk [vmem:[#allocation7] sm:$0x1] %vm156_vm9, %v154_v22 }
  0xb6   :  { %168 = dma.vmem_to_hbm [thread:$0]  %s164_s1, 16, %s166_s23, [#allocation4]  }
  0xb7   :  { %272 = dma.done.wait [#allocation4], 16  }
  0xb8   :  { %273 = vsyncadd [#allocation4], 4294967280 }
  0xb9   :  { %173 = vsyncpa [#allocation3], 1 }
  0xba   :  { %174 = vsyncpa [#allocation6], 1 }
  0xbb   :  { %175 = vsyncpa [#allocation4], 1 }

</bundles_post_ra>
